<compile_context>
chip_gen: v7x
topology: tpu7x:2x2x1
jax: 0.10.0
libtpu: 0.0.40
codegen_flags: <defaults>
</compile_context>

<pallas_src>
import functools

import jax
import jax.numpy as jnp
from jax.experimental import pallas as pl
from jax.experimental.pallas import tpu as pltpu


def _copy_kernel(x_ref, o_ref):
    # Identity copy of the current (tile_rows, lanes) tile.
    o_ref[...] = x_ref[...]


def _infer_target_shape(total, shape):
    """Mimic torch.view's -1 handling (reject multiple -1 explicitly)."""
    shape = tuple(int(s) for s in shape)
    neg = [i for i, s in enumerate(shape) if s == -1]
    if len(neg) > 1:
        raise ValueError("only one dimension can be inferred (-1)")
    if neg:
        idx = neg[0]
        known = 1
        for i, s in enumerate(shape):
            if i != idx:
                known *= s
        if known == 0 or total % known != 0:
            raise ValueError(f"cannot view {total} elements as {shape}")
        shape = shape[:idx] + (total // known,) + shape[idx + 1:]
    prod = 1
    for s in shape:
        prod *= s
    if prod != total:
        raise ValueError(f"cannot view {total} elements as {shape}")
    return shape


@functools.partial(
    jax.jit, static_argnames=("target_shape", "rows", "lanes", "tile_rows")
)
def _reshape_via_pallas(x, *, target_shape, rows, lanes, tile_rows):
    # Lane-dense slab over the row-major element stream (the order .view()
    # preserves for a contiguous tensor).  Under jit this reshape is free.
    slab = jnp.reshape(x, (rows, lanes))
    grid = (pl.cdiv(rows, tile_rows),)  # partial last block is masked by Pallas
    out = pl.pallas_call(
        _copy_kernel,
        out_shape=jax.ShapeDtypeStruct((rows, lanes), x.dtype),
        grid_spec=pltpu.PrefetchScalarGridSpec(
            num_scalar_prefetch=0,
            grid=grid,
            in_specs=[pl.BlockSpec((tile_rows, lanes), lambda i: (i, 0))],
            out_specs=pl.BlockSpec((tile_rows, lanes), lambda i: (i, 0)),
        ),
        input_output_aliases={0: 0},  # identity copy: reuse the input buffer
        compiler_params=pltpu.CompilerParams(
            dimension_semantics=("parallel",)
        ),
    )(slab)
    return jnp.reshape(out, target_shape)


class Reshape:
    """JAX/Pallas counterpart of the PyTorch Reshape module."""

    LANE_CANDIDATES = (1024, 512, 256, 128)  # prefer wider lane-dense blocks
    SUBLANES = 8
    # ~2 MiB per block; with in+out specs double-buffered that's ~8 MiB of
    # VMEM, safe on v5e (16 MiB scoped), v6e (32 MiB) and v7x (32 MiB), and
    # large enough to amortize the ~600-cycle per-grid-step overhead.
    TILE_BYTES = 2 * 1024 * 1024

    def __init__(self, *args):
        self.shape = args

    def __call__(self, x):
        total = int(x.size)
        target_shape = _infer_target_shape(total, self.shape)

        if total == 0:
            return jnp.reshape(x, target_shape)

        # Pick the widest lane count that keeps the slab (rows, lanes) with
        # rows a multiple of the sublane granule -> fully unmasked copies,
        # no padding and no extra HBM traffic.
        lanes = None
        for cand in self.LANE_CANDIDATES:
            if total % cand == 0 and (total // cand) % self.SUBLANES == 0:
                lanes = cand
                break

        if lanes is None:
            # Misaligned element count: .view() is metadata-only, so the
            # correct (and fastest) lowering is a plain reshape — no padded
            # copy, no HBM round trip.
            return jnp.reshape(x, target_shape)

        rows = total // lanes
        itemsize = jnp.dtype(x.dtype).itemsize
        tile_rows = (
            (self.TILE_BYTES // (lanes * itemsize))
            // self.SUBLANES
            * self.SUBLANES
        )
        tile_rows = max(self.SUBLANES, min(tile_rows, rows))

        return _reshape_via_pallas(
            x,
            target_shape=target_shape,
            rows=rows,
            lanes=lanes,
            tile_rows=tile_rows,
        )


if __name__ == "__main__":
    key = jax.random.PRNGKey(0)
    # Small NCHW-style input consistent with how the bVAE uses Reshape
    # (flattening conv features before an FC layer): (B, C, H, W).
    x = jax.random.normal(key, (2, 4, 16, 16), dtype=jnp.float32)

    # Equivalent of Reshape(2, -1): flatten per-batch.  total = 2048 elements
    # -> lane-aligned, exercises the Pallas copy path.
    reshape_mod = Reshape(2, -1)
    y = jax.block_until_ready(reshape_mod(x))

    y_ref = jnp.reshape(x, (2, -1))
    assert y.shape == (2, 4 * 16 * 16)
    assert y.dtype == x.dtype
    assert bool(jnp.all(y == y_ref))

    # Misaligned element count exercises the metadata-only fallback path.
    x2 = jax.random.normal(jax.random.PRNGKey(1), (3, 5, 7), dtype=jnp.float32)
    y2 = jax.block_until_ready(Reshape(-1)(x2))
    assert y2.shape == (105,)
    assert bool(jnp.all(y2 == jnp.reshape(x2, (-1,))))

    print("KERNEL_OK")
</pallas_src>

<mosaic_0001>
module attributes {stable_mosaic.version = 11 : i64} {
  func.func @_copy_kernel(%arg0: i32, %arg1: memref<8x256xf32, #tpu.memory_space<vmem>>, %arg2: memref<8x256xf32, #tpu.memory_space<vmem>>) attributes {dimension_semantics = [#tpu.dimension_semantics<parallel>], iteration_bounds = array<i64: 1>, scalar_prefetch = 0 : i64, scratch_operands = 0 : i64, tpu.core_type = #tpu.core_type<tc>, window_params = [{transform_indices = @transform_0, window_bounds = array<i64: 8, 256>}, {transform_indices = @transform_1, window_bounds = array<i64: 8, 256>}]} {
    %c0 = arith.constant 0 : index
    %c0_0 = arith.constant 0 : index
    %0 = vector.load %arg1[%c0, %c0_0] : memref<8x256xf32, #tpu.memory_space<vmem>>, vector<8x256xf32>
    %c0_1 = arith.constant 0 : index
    %c0_2 = arith.constant 0 : index
    %1 = vector.load %arg2[%c0_1, %c0_2] : memref<8x256xf32, #tpu.memory_space<vmem>>, vector<8x256xf32>
    tpu.vector_store %arg2[%c0_1, %c0_2], %0 {strides = array<i32>} : memref<8x256xf32, #tpu.memory_space<vmem>>, vector<8x256xf32>,
    return
  }
  func.func @transform_0(%arg0: i32) -> (i32, i32) {
    %c0_i32 = arith.constant 0 : i32
    %c0_i32_0 = arith.constant 0 : i32
    return %arg0, %c0_i32 : i32, i32
  }
  func.func @transform_1(%arg0: i32) -> (i32, i32) {
    %c0_i32 = arith.constant 0 : i32
    %c0_i32_0 = arith.constant 0 : i32
    return %arg0, %c0_i32 : i32, i32
  }
}

</mosaic_0001>

<bundles_post_ra>
// kernel: _reshape_via_pallas.1
= control target key start
LH: loop header
LB: loop body
LE: loop exit
PB: predicated region body
PF: predicated region fallthrough
CT: control target
= control target key end

     0   :  { %s38_s0 = inlined_call_operand.vmem [shape: f32[8,256], index: 0, kind: input, shape index: {}, may-alias: {0,1}]   ;;  %s39_s1 = inlined_call_operand.vmem [shape: f32[8,256], index: 1, kind: output, shape index: {}, may-alias: {0,1}]  }
   0x1   :  { %v8_v0 = vld [vmem:[%s38_s0] sm:$0xff]  ;;  %v9_v1 = vld [vmem:[%s38_s0 + $0x8] sm:$0xff] }
   0x2   :  { %10 = vst [vmem:[%s39_s1] sm:$0xff] %v8_v0  ;;  %11 = vst [vmem:[%s39_s1 + $0x8] sm:$0xff] %v9_v1 }

</bundles_post_ra>
